<compile_context>
chip_gen: v5e
topology: v5e:2x2
jax: 0.10.0
libtpu: 0.0.40
codegen_flags: <defaults>
</compile_context>

<pallas_src>
import functools

import jax
import jax.numpy as jnp
from jax.experimental import pallas as pl
from jax.experimental.pallas import tpu as pltpu


# ----------------------------------------------------------------------------
# In-kernel 3x3 conv over a flattened, reflect-padded row block
# ----------------------------------------------------------------------------

def _conv_taps(x_ref, w_ref, n_cols, wrow):
    """Nine accumulated MXU matmuls over contiguous tap slices.

    x_ref : (Cin, L) bf16 -- row block of the reflect-padded image, rows of
            width `wrow` = W + 2 flattened row-major, plus 2 zero tail columns
            so every tap slice stays in bounds (L = (TH+2)*wrow + 2).
    w_ref : (9, Cout, Cin) bf16 -- conv weight, tap-major.
    Returns (Cout, n_cols) f32 with n_cols = TH*wrow.  Column r*wrow + c is the
    conv output for (row r, col c) when c < W; the last two columns of each
    row are junk (masked / sliced away by the callers).
    """
    acc = None
    for t in range(9):
        dy, dx = divmod(t, 3)
        off = dy * wrow + dx
        xs = x_ref[:, off:off + n_cols]                  # contiguous static slice
        d = jnp.dot(w_ref[t], xs, preferred_element_type=jnp.float32)
        acc = d if acc is None else acc + d
    return acc


# ----------------------------------------------------------------------------
# Kernels
# ----------------------------------------------------------------------------

def _conv_affine_act_kernel(x_ref, w_ref, scale_ref, shift_ref, o_ref, *,
                            wrow, negative_slope):
    # Eval mode: conv + folded (bias, BN running stats) FMA + LeakyReLU.
    y = _conv_taps(x_ref, w_ref, o_ref.shape[-1], wrow)
    yn = y * scale_ref[...] + shift_ref[...]
    o_ref[...] = jnp.where(yn >= 0.0, yn, negative_slope * yn).astype(o_ref.dtype)


def _conv_stats_kernel(x_ref, w_ref, mask_ref, y_ref, s1_ref, s2_ref, *, wrow):
    # Training pass 1: conv (no bias) + one-pass per-channel sum / sum-of-sq.
    @pl.when((pl.program_id(0) == 0) & (pl.program_id(1) == 0))
    def _init():
        s1_ref[...] = jnp.zeros_like(s1_ref)
        s2_ref[...] = jnp.zeros_like(s2_ref)

    y = _conv_taps(x_ref, w_ref, y_ref.shape[-1], wrow)
    y_ref[...] = y                      # f32 intermediate (pre-BN); bf16 here
                                        # would halve traffic at some precision cost.
    ym = y * mask_ref[...]              # zero the junk (reflect-pad) columns
    s1_ref[...] += jnp.sum(ym, axis=1, keepdims=True)
    s2_ref[...] += jnp.sum(ym * y, axis=1, keepdims=True)


def _affine_act_kernel(y_ref, scale_ref, shift_ref, o_ref, *, negative_slope):
    # Training pass 2: y * scale + shift, LeakyReLU, bf16 store.
    yn = y_ref[...] * scale_ref[...] + shift_ref[...]
    o_ref[...] = jnp.where(yn >= 0.0, yn, negative_slope * yn).astype(o_ref.dtype)


# ----------------------------------------------------------------------------
# Wrapper (layout plumbing + pallas_call)
# ----------------------------------------------------------------------------

def _pick_row_block(h, wrow, target):
    """Largest TH <= target with H % TH == 0 and (TH*wrow) % 128 == 0 (lane-
    dense, (8,128)-legal blocks); falls back to TH = H (full-dim block)."""
    for th in range(min(h, max(1, target)), 0, -1):
        if h % th == 0 and (th * wrow) % 128 == 0:
            return th
    return h


def johnson_conv_layer(x, params, *, training=True, eps=1e-5,
                       negative_slope=0.2, momentum=0.1,
                       row_block_target=64, out_dtype=jnp.bfloat16):
    """Fused reflect-pad 3x3 conv + BatchNorm2d + LeakyReLU(0.2); NCHW in/out.

    Returns (out, bn_state) where bn_state carries the momentum-updated
    running_mean / running_var in training mode (pass-through in eval mode).
    """
    N, Cin, H, W = x.shape
    w_pt = params["w"]
    Cout = w_pt.shape[0]
    assert w_pt.shape == (Cout, Cin, 3, 3)

    wrow = W + 2                        # row width of the reflect-padded image
    th = _pick_row_block(H, wrow, row_block_target)
    rb = H // th                        # row blocks per image
    m = th * wrow                       # output lanes per block
    l = (th + 2) * wrow + 2             # input lanes per block (halo + tap tail)

    # ---- layout plumbing: one cheap repack (vs. the old 9x HBM im2col) ------
    xp = jnp.pad(x, ((0, 0), (0, 0), (1, 1), (1, 1)), mode="reflect")
    xp = xp.astype(jnp.bfloat16)                               # (N, Cin, H+2, wrow)
    if rb == 1:
        xb = xp[:, None]
    else:   # overlapping row blocks with a 2-row halo
        xb = jnp.stack([xp[:, :, r * th:r * th + th + 2, :] for r in range(rb)],
                       axis=1)                                 # (N, rb, Cin, th+2, wrow)
    xb = xb.reshape(N, rb, Cin, (th + 2) * wrow)
    xb = jnp.pad(xb, ((0, 0), (0, 0), (0, 0), (0, 2)))         # -> (N, rb, Cin, l)

    # conv weight -> tap-major (9, Cout, Cin) bf16
    w9 = jnp.transpose(w_pt, (2, 3, 0, 1)).reshape(9, Cout, Cin).astype(jnp.bfloat16)

    col = lambda v: jnp.asarray(v, jnp.float32).reshape(Cout, 1)

    x_spec = pl.BlockSpec((None, None, Cin, l), lambda n, r: (n, r, 0, 0))
    w_spec = pl.BlockSpec((9, Cout, Cin), lambda n, r: (0, 0, 0))
    vec_spec = pl.BlockSpec((Cout, 1), lambda n, r: (0, 0))
    y_spec = pl.BlockSpec((None, Cout, m), lambda n, r: (n, 0, r))
    grid = (N, rb)

    # VMEM budget: double-buffered blocks + resident weights + f32 accumulator.
    # TODO(synk): derive per generation (v7x: 64 MiB physical VMEM) and shrink
    # row_block_target automatically when this exceeds the budget.
    blk_bytes = 2 * Cin * l * 2 + 2 * Cout * m * 4 + 9 * Cout * Cin * 2 + Cout * m * 4
    vmem_limit = int(min(max(2 * blk_bytes, 16 * 1024 * 1024), 64 * 1024 * 1024))

    if not training:
        # Fold conv bias + BatchNorm(running stats) into one per-channel FMA.
        scale = params["gamma"] * jax.lax.rsqrt(params["running_var"] + eps)
        shift = params["beta"] + (params["b"] - params["running_mean"]) * scale
        out = pl.pallas_call(
            functools.partial(_conv_affine_act_kernel, wrow=wrow,
                              negative_slope=negative_slope),
            grid=grid,
            in_specs=[x_spec, w_spec, vec_spec, vec_spec],
            out_specs=y_spec,
            out_shape=jax.ShapeDtypeStruct((N, Cout, H * wrow), out_dtype),
            compiler_params=pltpu.CompilerParams(
                dimension_semantics=("parallel", "parallel"),
                vmem_limit_bytes=vmem_limit),
        )(xb, w9, col(scale), col(shift))
        out = out.reshape(N, Cout, H, wrow)[:, :, :, :W]
        return out, {"running_mean": params["running_mean"],
                     "running_var": params["running_var"]}

    # ---- training pass 1: conv + one-pass per-channel sum / sum-of-squares.
    # Conv bias is dropped (it cancels against the batch mean) and re-added
    # only for the running_mean update below.
    mask = jnp.tile((jnp.arange(wrow) < W).astype(jnp.float32), H).reshape(1, H * wrow)
    mask_spec = pl.BlockSpec((1, m), lambda n, r: (0, r))
    stat_spec = pl.BlockSpec((Cout, 1), lambda n, r: (0, 0))    # resident accumulator

    y, s1, s2 = pl.pallas_call(
        functools.partial(_conv_stats_kernel, wrow=wrow),
        grid=grid,
        in_specs=[x_spec, w_spec, mask_spec],
        out_specs=(y_spec, stat_spec, stat_spec),
        out_shape=(jax.ShapeDtypeStruct((N, Cout, H * wrow), jnp.float32),
                   jax.ShapeDtypeStruct((Cout, 1), jnp.float32),
                   jax.ShapeDtypeStruct((Cout, 1), jnp.float32)),
        # TODO(synk): two-phase (per-core partial) batch stats so these axes
        # can be "parallel" across the two v7x TensorCores.
        compiler_params=pltpu.CompilerParams(
            dimension_semantics=("arbitrary", "arbitrary"),
            vmem_limit_bytes=vmem_limit),
    )(xb, w9, mask)

    count = N * H * W
    mean = s1 / count                                      # (Cout, 1), excl. bias
    var = jnp.maximum(s2 / count - mean * mean, 0.0)       # biased batch var (f32)
    scale = params["gamma"].reshape(Cout, 1) * jax.lax.rsqrt(var + eps)
    shift = params["beta"].reshape(Cout, 1) - mean * scale

    # ---- training pass 2: apply scale/shift + LeakyReLU, bf16 store.
    out = pl.pallas_call(
        functools.partial(_affine_act_kernel, negative_slope=negative_slope),
        grid=grid,
        in_specs=[y_spec, vec_spec, vec_spec],
        out_specs=y_spec,
        out_shape=jax.ShapeDtypeStruct((N, Cout, H * wrow), out_dtype),
        compiler_params=pltpu.CompilerParams(
            dimension_semantics=("parallel", "parallel"),
            vmem_limit_bytes=vmem_limit),
    )(y, scale, shift)
    out = out.reshape(N, Cout, H, wrow)[:, :, :, :W]

    # PyTorch BatchNorm2d running-stat update (momentum=0.1, unbiased var).
    batch_mean = mean[:, 0] + params["b"]
    unbiased_var = var[:, 0] * (count / max(count - 1, 1))
    bn_state = {
        "running_mean": (1.0 - momentum) * params["running_mean"] + momentum * batch_mean,
        "running_var": (1.0 - momentum) * params["running_var"] + momentum * unbiased_var,
    }
    return out, bn_state


# ----------------------------------------------------------------------------
# Deterministic parameter construction (in-script, no files)
# ----------------------------------------------------------------------------

def init_johnson_conv_params(key, in_channels, out_channels):
    kw, kb, kg, kbe, km, kv = jax.random.split(key, 6)
    fan_in = 9 * in_channels
    w = jax.random.normal(kw, (out_channels, in_channels, 3, 3),
                          jnp.float32) * (2.0 / fan_in) ** 0.5
    b = 0.05 * jax.random.normal(kb, (out_channels,), jnp.float32)
    gamma = 1.0 + 0.1 * jax.random.normal(kg, (out_channels,), jnp.float32)
    beta = 0.1 * jax.random.normal(kbe, (out_channels,), jnp.float32)
    running_mean = 0.05 * jax.random.normal(km, (out_channels,), jnp.float32)
    running_var = 1.0 + 0.1 * jnp.abs(
        jax.random.normal(kv, (out_channels,), jnp.float32))
    return {"w": w, "b": b, "gamma": gamma, "beta": beta,
            "running_mean": running_mean, "running_var": running_var}


# ----------------------------------------------------------------------------
# Pure-JAX references (same bf16-rounded operands) for numerical sanity checks
# ----------------------------------------------------------------------------

def _reference_conv(x, params):
    w = params["w"].astype(jnp.bfloat16).astype(jnp.float32)
    xb = x.astype(jnp.bfloat16).astype(jnp.float32)
    xp = jnp.pad(xb, ((0, 0), (0, 0), (1, 1), (1, 1)), mode="reflect")
    y = jax.lax.conv_general_dilated(
        xp, w, window_strides=(1, 1), padding="VALID",
        dimension_numbers=("NCHW", "OIHW", "NCHW"),
        precision=jax.lax.Precision.HIGHEST)
    return y + params["b"].reshape(1, -1, 1, 1)


def reference_forward(x, params, *, training=True, eps=1e-5, negative_slope=0.2):
    y = _reference_conv(x, params)
    if training:
        mean = jnp.mean(y, axis=(0, 2, 3), keepdims=True)
        var = jnp.mean((y - mean) ** 2, axis=(0, 2, 3), keepdims=True)
    else:
        mean = params["running_mean"].reshape(1, -1, 1, 1)
        var = params["running_var"].reshape(1, -1, 1, 1)
    yn = (y - mean) * (params["gamma"].reshape(1, -1, 1, 1)
                       / jnp.sqrt(var + eps)) + params["beta"].reshape(1, -1, 1, 1)
    return jnp.where(yn >= 0, yn, negative_slope * yn)


def reference_batch_stats(x, params):
    y = _reference_conv(x, params)
    return jnp.mean(y, axis=(0, 2, 3)), jnp.var(y, axis=(0, 2, 3), ddof=1)


# ----------------------------------------------------------------------------
# Main
# ----------------------------------------------------------------------------

if __name__ == "__main__":
    key = jax.random.PRNGKey(0)
    k_p1, k_x1, k_p2, k_x2 = jax.random.split(key, 4)

    # ---- Case 1: (2, 4, 16, 16) -- one row block per image, grid over batch.
    params = init_johnson_conv_params(k_p1, 4, 8)
    x = jax.random.uniform(k_x1, (2, 4, 16, 16), jnp.float32)

    fwd_train = jax.jit(functools.partial(johnson_conv_layer, training=True))
    out_train, bn_state = jax.block_until_ready(fwd_train(x, params))
    assert out_train.shape == (2, 8, 16, 16)

    fwd_eval = jax.jit(functools.partial(johnson_conv_layer, training=False))
    out_eval, _ = jax.block_until_ready(fwd_eval(x, params))
    assert out_eval.shape == (2, 8, 16, 16)

    ref_train = reference_forward(x, params, training=True)
    ref_eval = reference_forward(x, params, training=False)
    # The kernel emits bf16 (half the writeback of f32); tolerance covers the
    # ~2^-9 relative output quantization on values of magnitude up to ~5.
    err_t = float(jnp.max(jnp.abs(out_train.astype(jnp.float32) - ref_train)))
    err_e = float(jnp.max(jnp.abs(out_eval.astype(jnp.float32) - ref_eval)))
    assert err_t < 2e-2 and err_e < 2e-2, (err_t, err_e)

    # Running-stat update parity with PyTorch BatchNorm2d (momentum = 0.1).
    bm, bv = reference_batch_stats(x, params)
    rm_exp = 0.9 * params["running_mean"] + 0.1 * bm
    rv_exp = 0.9 * params["running_var"] + 0.1 * bv
    assert float(jnp.max(jnp.abs(bn_state["running_mean"] - rm_exp))) < 5e-3
    assert float(jnp.max(jnp.abs(bn_state["running_var"] - rv_exp))) < 5e-3

    # ---- Case 2: (1, 3, 16, 30), row_block_target=8 -> 2 haloed row blocks
    # per image (exercises spatial tiling, the lane mask and the resident stat
    # accumulators across multiple grid steps).
    params2 = init_johnson_conv_params(k_p2, 3, 16)
    x2 = jax.random.uniform(k_x2, (1, 3, 16, 30), jnp.float32)
    fwd2_t = jax.jit(functools.partial(johnson_conv_layer, training=True,
                                       row_block_target=8))
    fwd2_e = jax.jit(functools.partial(johnson_conv_layer, training=False,
                                       row_block_target=8))
    out2_t, _ = jax.block_until_ready(fwd2_t(x2, params2))
    out2_e, _ = jax.block_until_ready(fwd2_e(x2, params2))
    assert out2_t.shape == (1, 16, 16, 30) and out2_e.shape == (1, 16, 16, 30)
    err2_t = float(jnp.max(jnp.abs(out2_t.astype(jnp.float32)
                                   - reference_forward(x2, params2, training=True))))
    err2_e = float(jnp.max(jnp.abs(out2_e.astype(jnp.float32)
                                   - reference_forward(x2, params2, training=False))))
    assert err2_t < 2e-2 and err2_e < 2e-2, (err2_t, err2_e)

    print("KERNEL_OK")
</pallas_src>

<mosaic_0001>
module attributes {stable_mosaic.version = 11 : i64} {
  func.func @_conv_stats_kernel(%arg0: i32, %arg1: i32, %arg2: memref<1x1x4x326xbf16, #tpu.memory_space<vmem>>, %arg3: memref<9x8x4xbf16, #tpu.memory_space<vmem>>, %arg4: memref<1x288xf32, #tpu.memory_space<vmem>>, %arg5: memref<1x8x288xf32, #tpu.memory_space<vmem>>, %arg6: memref<8x1xf32, #tpu.memory_space<vmem>>, %arg7: memref<8x1xf32, #tpu.memory_space<vmem>>) attributes {dimension_semantics = [#tpu.dimension_semantics<arbitrary>, #tpu.dimension_semantics<arbitrary>], iteration_bounds = array<i64: 2, 1>, scalar_prefetch = 0 : i64, scratch_operands = 0 : i64, tpu.core_type = #tpu.core_type<tc>, window_params = [{transform_indices = @transform_0, window_bounds = array<i64: 1, 1, 4, 326>}, {pipeline_mode = #tpu.pipeline_mode<synchronous>, transform_indices = @transform_1, window_bounds = array<i64: 9, 8, 4>}, {transform_indices = @transform_2, window_bounds = array<i64: 1, 288>}, {transform_indices = @transform_3, window_bounds = array<i64: 1, 8, 288>}, {pipeline_mode = #tpu.pipeline_mode<synchronous>, transform_indices = @transform_4, window_bounds = array<i64: 8, 1>}, {pipeline_mode = #tpu.pipeline_mode<synchronous>, transform_indices = @transform_5, window_bounds = array<i64: 8, 1>}]} {
    %c0_i32 = arith.constant 0 : i32
    %0 = arith.cmpi eq, %arg0, %c0_i32 : i32
    %c0_i32_0 = arith.constant 0 : i32
    %1 = arith.cmpi eq, %arg1, %c0_i32_0 : i32
    %2 = arith.andi %0, %1 : i1
    %3 = arith.extui %2 : i1 to i32
    %c0_i32_1 = arith.constant 0 : i32
    %4 = arith.cmpi ne, %3, %c0_i32_1 : i32
    scf.if %4 {
      %cst_73 = arith.constant 0.000000e+00 : f32
      %75 = vector.broadcast %cst_73 : f32 to vector<8x1xf32>
      %c0_74 = arith.constant 0 : index
      %c0_75 = arith.constant 0 : index
      %76 = vector.load %arg6[%c0_74, %c0_75] : memref<8x1xf32, #tpu.memory_space<vmem>>, vector<8x1xf32>
      tpu.vector_store %arg6[%c0_74, %c0_75], %75 {strides = array<i32>} : memref<8x1xf32, #tpu.memory_space<vmem>>, vector<8x1xf32>,
      %cst_76 = arith.constant 0.000000e+00 : f32
      %77 = vector.broadcast %cst_76 : f32 to vector<8x1xf32>
      %c0_77 = arith.constant 0 : index
      %c0_78 = arith.constant 0 : index
      %78 = vector.load %arg7[%c0_77, %c0_78] : memref<8x1xf32, #tpu.memory_space<vmem>>, vector<8x1xf32>
      tpu.vector_store %arg7[%c0_77, %c0_78], %77 {strides = array<i32>} : memref<8x1xf32, #tpu.memory_space<vmem>>, vector<8x1xf32>,
    } else {
    }
    %c0 = arith.constant 0 : index
    %c0_2 = arith.constant 0 : index
    %c0_3 = arith.constant 0 : index
    %c0_4 = arith.constant 0 : index
    %5 = vector.load %arg2[%c0, %c0_2, %c0_3, %c0_4] : memref<1x1x4x326xbf16, #tpu.memory_space<vmem>>, vector<1x1x4x288xbf16>
    %6 = vector.shape_cast %5 : vector<1x1x4x288xbf16> to vector<4x288xbf16>
    %c0_5 = arith.constant 0 : index
    %c0_6 = arith.constant 0 : index
    %c0_7 = arith.constant 0 : index
    %7 = vector.load %arg3[%c0_5, %c0_6, %c0_7] : memref<9x8x4xbf16, #tpu.memory_space<vmem>>, vector<1x8x4xbf16>
    %8 = vector.shape_cast %7 : vector<1x8x4xbf16> to vector<8x4xbf16>
    %cst = arith.constant dense<0.000000e+00> : vector<8x288xf32>
    %9 = tpu.matmul %8, %6, %cst {dimension_numbers = #tpu.dot_dimension_numbers<[1], [0], [0], [1], [0, 0, 1, 1], [], []>} : vector<8x4xbf16>, vector<4x288xbf16>, vector<8x288xf32> -> vector<8x288xf32>
    %c0_8 = arith.constant 0 : index
    %c0_9 = arith.constant 0 : index
    %c0_10 = arith.constant 0 : index
    %c1 = arith.constant 1 : index
    %10 = vector.load %arg2[%c0_8, %c0_9, %c0_10, %c1] : memref<1x1x4x326xbf16, #tpu.memory_space<vmem>>, vector<1x1x4x288xbf16>
    %11 = vector.shape_cast %10 : vector<1x1x4x288xbf16> to vector<4x288xbf16>
    %c1_11 = arith.constant 1 : index
    %c0_12 = arith.constant 0 : index
    %c0_13 = arith.constant 0 : index
    %12 = vector.load %arg3[%c1_11, %c0_12, %c0_13] : memref<9x8x4xbf16, #tpu.memory_space<vmem>>, vector<1x8x4xbf16>
    %13 = vector.shape_cast %12 : vector<1x8x4xbf16> to vector<8x4xbf16>
    %cst_14 = arith.constant dense<0.000000e+00> : vector<8x288xf32>
    %14 = tpu.matmul %13, %11, %cst_14 {dimension_numbers = #tpu.dot_dimension_numbers<[1], [0], [0], [1], [0, 0, 1, 1], [], []>} : vector<8x4xbf16>, vector<4x288xbf16>, vector<8x288xf32> -> vector<8x288xf32>
    %15 = arith.addf %9, %14 : vector<8x288xf32>
    %c0_15 = arith.constant 0 : index
    %c0_16 = arith.constant 0 : index
    %c0_17 = arith.constant 0 : index
    %c2 = arith.constant 2 : index
    %16 = vector.load %arg2[%c0_15, %c0_16, %c0_17, %c2] : memref<1x1x4x326xbf16, #tpu.memory_space<vmem>>, vector<1x1x4x288xbf16>
    %17 = vector.shape_cast %16 : vector<1x1x4x288xbf16> to vector<4x288xbf16>
    %c2_18 = arith.constant 2 : index
    %c0_19 = arith.constant 0 : index
    %c0_20 = arith.constant 0 : index
    %18 = vector.load %arg3[%c2_18, %c0_19, %c0_20] : memref<9x8x4xbf16, #tpu.memory_space<vmem>>, vector<1x8x4xbf16>
    %19 = vector.shape_cast %18 : vector<1x8x4xbf16> to vector<8x4xbf16>
    %cst_21 = arith.constant dense<0.000000e+00> : vector<8x288xf32>
    %20 = tpu.matmul %19, %17, %cst_21 {dimension_numbers = #tpu.dot_dimension_numbers<[1], [0], [0], [1], [0, 0, 1, 1], [], []>} : vector<8x4xbf16>, vector<4x288xbf16>, vector<8x288xf32> -> vector<8x288xf32>
    %21 = arith.addf %15, %20 : vector<8x288xf32>
    %c0_22 = arith.constant 0 : index
    %c0_23 = arith.constant 0 : index
    %c0_24 = arith.constant 0 : index
    %c18 = arith.constant 18 : index
    %22 = vector.load %arg2[%c0_22, %c0_23, %c0_24, %c18] : memref<1x1x4x326xbf16, #tpu.memory_space<vmem>>, vector<1x1x4x288xbf16>
    %23 = vector.shape_cast %22 : vector<1x1x4x288xbf16> to vector<4x288xbf16>
    %c3 = arith.constant 3 : index
    %c0_25 = arith.constant 0 : index
    %c0_26 = arith.constant 0 : index
    %24 = vector.load %arg3[%c3, %c0_25, %c0_26] : memref<9x8x4xbf16, #tpu.memory_space<vmem>>, vector<1x8x4xbf16>
    %25 = vector.shape_cast %24 : vector<1x8x4xbf16> to vector<8x4xbf16>
    %cst_27 = arith.constant dense<0.000000e+00> : vector<8x288xf32>
    %26 = tpu.matmul %25, %23, %cst_27 {dimension_numbers = #tpu.dot_dimension_numbers<[1], [0], [0], [1], [0, 0, 1, 1], [], []>} : vector<8x4xbf16>, vector<4x288xbf16>, vector<8x288xf32> -> vector<8x288xf32>
    %27 = arith.addf %21, %26 : vector<8x288xf32>
    %c0_28 = arith.constant 0 : index
    %c0_29 = arith.constant 0 : index
    %c0_30 = arith.constant 0 : index
    %c19 = arith.constant 19 : index
    %28 = vector.load %arg2[%c0_28, %c0_29, %c0_30, %c19] : memref<1x1x4x326xbf16, #tpu.memory_space<vmem>>, vector<1x1x4x288xbf16>
    %29 = vector.shape_cast %28 : vector<1x1x4x288xbf16> to vector<4x288xbf16>
    %c4 = arith.constant 4 : index
    %c0_31 = arith.constant 0 : index
    %c0_32 = arith.constant 0 : index
    %30 = vector.load %arg3[%c4, %c0_31, %c0_32] : memref<9x8x4xbf16, #tpu.memory_space<vmem>>, vector<1x8x4xbf16>
    %31 = vector.shape_cast %30 : vector<1x8x4xbf16> to vector<8x4xbf16>
    %cst_33 = arith.constant dense<0.000000e+00> : vector<8x288xf32>
    %32 = tpu.matmul %31, %29, %cst_33 {dimension_numbers = #tpu.dot_dimension_numbers<[1], [0], [0], [1], [0, 0, 1, 1], [], []>} : vector<8x4xbf16>, vector<4x288xbf16>, vector<8x288xf32> -> vector<8x288xf32>
    %33 = arith.addf %27, %32 : vector<8x288xf32>
    %c0_34 = arith.constant 0 : index
    %c0_35 = arith.constant 0 : index
    %c0_36 = arith.constant 0 : index
    %c20 = arith.constant 20 : index
    %34 = vector.load %arg2[%c0_34, %c0_35, %c0_36, %c20] : memref<1x1x4x326xbf16, #tpu.memory_space<vmem>>, vector<1x1x4x288xbf16>
    %35 = vector.shape_cast %34 : vector<1x1x4x288xbf16> to vector<4x288xbf16>
    %c5 = arith.constant 5 : index
    %c0_37 = arith.constant 0 : index
    %c0_38 = arith.constant 0 : index
    %36 = vector.load %arg3[%c5, %c0_37, %c0_38] : memref<9x8x4xbf16, #tpu.memory_space<vmem>>, vector<1x8x4xbf16>
    %37 = vector.shape_cast %36 : vector<1x8x4xbf16> to vector<8x4xbf16>
    %cst_39 = arith.constant dense<0.000000e+00> : vector<8x288xf32>
    %38 = tpu.matmul %37, %35, %cst_39 {dimension_numbers = #tpu.dot_dimension_numbers<[1], [0], [0], [1], [0, 0, 1, 1], [], []>} : vector<8x4xbf16>, vector<4x288xbf16>, vector<8x288xf32> -> vector<8x288xf32>
    %39 = arith.addf %33, %38 : vector<8x288xf32>
    %c0_40 = arith.constant 0 : index
    %c0_41 = arith.constant 0 : index
    %c0_42 = arith.constant 0 : index
    %c36 = arith.constant 36 : index
    %40 = vector.load %arg2[%c0_40, %c0_41, %c0_42, %c36] : memref<1x1x4x326xbf16, #tpu.memory_space<vmem>>, vector<1x1x4x288xbf16>
    %41 = vector.shape_cast %40 : vector<1x1x4x288xbf16> to vector<4x288xbf16>
    %c6 = arith.constant 6 : index
    %c0_43 = arith.constant 0 : index
    %c0_44 = arith.constant 0 : index
    %42 = vector.load %arg3[%c6, %c0_43, %c0_44] : memref<9x8x4xbf16, #tpu.memory_space<vmem>>, vector<1x8x4xbf16>
    %43 = vector.shape_cast %42 : vector<1x8x4xbf16> to vector<8x4xbf16>
    %cst_45 = arith.constant dense<0.000000e+00> : vector<8x288xf32>
    %44 = tpu.matmul %43, %41, %cst_45 {dimension_numbers = #tpu.dot_dimension_numbers<[1], [0], [0], [1], [0, 0, 1, 1], [], []>} : vector<8x4xbf16>, vector<4x288xbf16>, vector<8x288xf32> -> vector<8x288xf32>
    %45 = arith.addf %39, %44 : vector<8x288xf32>
    %c0_46 = arith.constant 0 : index
    %c0_47 = arith.constant 0 : index
    %c0_48 = arith.constant 0 : index
    %c37 = arith.constant 37 : index
    %46 = vector.load %arg2[%c0_46, %c0_47, %c0_48, %c37] : memref<1x1x4x326xbf16, #tpu.memory_space<vmem>>, vector<1x1x4x288xbf16>
    %47 = vector.shape_cast %46 : vector<1x1x4x288xbf16> to vector<4x288xbf16>
    %c7 = arith.constant 7 : index
    %c0_49 = arith.constant 0 : index
    %c0_50 = arith.constant 0 : index
    %48 = vector.load %arg3[%c7, %c0_49, %c0_50] : memref<9x8x4xbf16, #tpu.memory_space<vmem>>, vector<1x8x4xbf16>
    %49 = vector.shape_cast %48 : vector<1x8x4xbf16> to vector<8x4xbf16>
    %cst_51 = arith.constant dense<0.000000e+00> : vector<8x288xf32>
    %50 = tpu.matmul %49, %47, %cst_51 {dimension_numbers = #tpu.dot_dimension_numbers<[1], [0], [0], [1], [0, 0, 1, 1], [], []>} : vector<8x4xbf16>, vector<4x288xbf16>, vector<8x288xf32> -> vector<8x288xf32>
    %51 = arith.addf %45, %50 : vector<8x288xf32>
    %c0_52 = arith.constant 0 : index
    %c0_53 = arith.constant 0 : index
    %c0_54 = arith.constant 0 : index
    %c38 = arith.constant 38 : index
    %52 = vector.load %arg2[%c0_52, %c0_53, %c0_54, %c38] : memref<1x1x4x326xbf16, #tpu.memory_space<vmem>>, vector<1x1x4x288xbf16>
    %53 = vector.shape_cast %52 : vector<1x1x4x288xbf16> to vector<4x288xbf16>
    %c8 = arith.constant 8 : index
    %c0_55 = arith.constant 0 : index
    %c0_56 = arith.constant 0 : index
    %54 = vector.load %arg3[%c8, %c0_55, %c0_56] : memref<9x8x4xbf16, #tpu.memory_space<vmem>>, vector<1x8x4xbf16>
    %55 = vector.shape_cast %54 : vector<1x8x4xbf16> to vector<8x4xbf16>
    %cst_57 = arith.constant dense<0.000000e+00> : vector<8x288xf32>
    %56 = tpu.matmul %55, %53, %cst_57 {dimension_numbers = #tpu.dot_dimension_numbers<[1], [0], [0], [1], [0, 0, 1, 1], [], []>} : vector<8x4xbf16>, vector<4x288xbf16>, vector<8x288xf32> -> vector<8x288xf32>
    %57 = arith.addf %51, %56 : vector<8x288xf32>
    %c0_58 = arith.constant 0 : index
    %c0_59 = arith.constant 0 : index
    %c0_60 = arith.constant 0 : index
    %58 = vector.load %arg5[%c0_58, %c0_59, %c0_60] : memref<1x8x288xf32, #tpu.memory_space<vmem>>, vector<1x8x288xf32>
    %59 = vector.shape_cast %58 : vector<1x8x288xf32> to vector<8x288xf32>
    %60 = vector.shape_cast %57 : vector<8x288xf32> to vector<1x8x288xf32>
    tpu.vector_store %arg5[%c0_58, %c0_59, %c0_60], %60 {strides = array<i32>} : memref<1x8x288xf32, #tpu.memory_space<vmem>>, vector<1x8x288xf32>,
    %c0_61 = arith.constant 0 : index
    %c0_62 = arith.constant 0 : index
    %61 = vector.load %arg4[%c0_61, %c0_62] : memref<1x288xf32, #tpu.memory_space<vmem>>, vector<1x288xf32>
    %62 = vector.broadcast %61 : vector<1x288xf32> to vector<8x288xf32>
    %63 = arith.mulf %57, %62 : vector<8x288xf32>
    %c0_63 = arith.constant 0 : index
    %c0_64 = arith.constant 0 : index
    %64 = vector.load %arg6[%c0_63, %c0_64] : memref<8x1xf32, #tpu.memory_space<vmem>>, vector<8x1xf32>
    %cst_65 = arith.constant dense<0.000000e+00> : vector<8xf32>
    %65 = vector.multi_reduction <add>, %63, %cst_65 [1] : vector<8x288xf32> to vector<8xf32>
    %66 = vector.shape_cast %65 : vector<8xf32> to vector<8x1xf32>
    %67 = arith.addf %64, %66 : vector<8x1xf32>
    %c0_66 = arith.constant 0 : index
    %c0_67 = arith.constant 0 : index
    %68 = vector.load %arg6[%c0_66, %c0_67] : memref<8x1xf32, #tpu.memory_space<vmem>>, vector<8x1xf32>
    tpu.vector_store %arg6[%c0_66, %c0_67], %67 {strides = array<i32>} : memref<8x1xf32, #tpu.memory_space<vmem>>, vector<8x1xf32>,
    %c0_68 = arith.constant 0 : index
    %c0_69 = arith.constant 0 : index
    %69 = vector.load %arg7[%c0_68, %c0_69] : memref<8x1xf32, #tpu.memory_space<vmem>>, vector<8x1xf32>
    %70 = arith.mulf %63, %57 : vector<8x288xf32>
    %cst_70 = arith.constant dense<0.000000e+00> : vector<8xf32>
    %71 = vector.multi_reduction <add>, %70, %cst_70 [1] : vector<8x288xf32> to vector<8xf32>
    %72 = vector.shape_cast %71 : vector<8xf32> to vector<8x1xf32>
    %73 = arith.addf %69, %72 : vector<8x1xf32>
    %c0_71 = arith.constant 0 : index
    %c0_72 = arith.constant 0 : index
    %74 = vector.load %arg7[%c0_71, %c0_72] : memref<8x1xf32, #tpu.memory_space<vmem>>, vector<8x1xf32>
    tpu.vector_store %arg7[%c0_71, %c0_72], %73 {strides = array<i32>} : memref<8x1xf32, #tpu.memory_space<vmem>>, vector<8x1xf32>,
    return
  }
  func.func @transform_0(%arg0: i32, %arg1: i32) -> (i32, i32, i32, i32) {
    %c0_i32 = arith.constant 0 : i32
    %c0_i32_0 = arith.constant 0 : i32
    %c0_i32_1 = arith.constant 0 : i32
    return %arg0, %arg1, %c0_i32, %c0_i32_0 : i32, i32, i32, i32
  }
  func.func @transform_1(%arg0: i32, %arg1: i32) -> (i32, i32, i32) {
    %c0_i32 = arith.constant 0 : i32
    %c0_i32_0 = arith.constant 0 : i32
    %c0_i32_1 = arith.constant 0 : i32
    %c0_i32_2 = arith.constant 0 : i32
    return %c0_i32, %c0_i32_0, %c0_i32_1 : i32, i32, i32
  }
  func.func @transform_2(%arg0: i32, %arg1: i32) -> (i32, i32) {
    %c0_i32 = arith.constant 0 : i32
    %c0_i32_0 = arith.constant 0 : i32
    return %c0_i32, %arg1 : i32, i32
  }
  func.func @transform_3(%arg0: i32, %arg1: i32) -> (i32, i32, i32) {
    %c0_i32 = arith.constant 0 : i32
    %c0_i32_0 = arith.constant 0 : i32
    return %arg0, %c0_i32, %arg1 : i32, i32, i32
  }
  func.func @transform_4(%arg0: i32, %arg1: i32) -> (i32, i32) {
    %c0_i32 = arith.constant 0 : i32
    %c0_i32_0 = arith.constant 0 : i32
    %c0_i32_1 = arith.constant 0 : i32
    return %c0_i32, %c0_i32_0 : i32, i32
  }
  func.func @transform_5(%arg0: i32, %arg1: i32) -> (i32, i32) {
    %c0_i32 = arith.constant 0 : i32
    %c0_i32_0 = arith.constant 0 : i32
    %c0_i32_1 = arith.constant 0 : i32
    return %c0_i32, %c0_i32_0 : i32, i32
  }
}

module attributes {stable_mosaic.version = 11 : i64} {
  func.func @_affine_act_kernel(%arg0: i32, %arg1: i32, %arg2: memref<1x8x288xf32, #tpu.memory_space<vmem>>, %arg3: memref<8x1xf32, #tpu.memory_space<vmem>>, %arg4: memref<8x1xf32, #tpu.memory_space<vmem>>, %arg5: memref<1x8x288xbf16, #tpu.memory_space<vmem>>) attributes {dimension_semantics = [#tpu.dimension_semantics<parallel>, #tpu.dimension_semantics<parallel>], iteration_bounds = array<i64: 2, 1>, scalar_prefetch = 0 : i64, scratch_operands = 0 : i64, tpu.core_type = #tpu.core_type<tc>, window_params = [{transform_indices = @transform_0, window_bounds = array<i64: 1, 8, 288>}, {pipeline_mode = #tpu.pipeline_mode<synchronous>, transform_indices = @transform_1, window_bounds = array<i64: 8, 1>}, {pipeline_mode = #tpu.pipeline_mode<synchronous>, transform_indices = @transform_2, window_bounds = array<i64: 8, 1>}, {transform_indices = @transform_3, window_bounds = array<i64: 1, 8, 288>}]} {
    %c0 = arith.constant 0 : index
    %c0_0 = arith.constant 0 : index
    %c0_1 = arith.constant 0 : index
    %0 = vector.load %arg2[%c0, %c0_0, %c0_1] : memref<1x8x288xf32, #tpu.memory_space<vmem>>, vector<1x8x288xf32>
    %1 = vector.shape_cast %0 : vector<1x8x288xf32> to vector<8x288xf32>
    %c0_2 = arith.constant 0 : index
    %c0_3 = arith.constant 0 : index
    %2 = vector.load %arg3[%c0_2, %c0_3] : memref<8x1xf32, #tpu.memory_space<vmem>>, vector<8x1xf32>
    %3 = vector.broadcast %2 : vector<8x1xf32> to vector<8x288xf32>
    %4 = arith.mulf %1, %3 : vector<8x288xf32>
    %c0_4 = arith.constant 0 : index
    %c0_5 = arith.constant 0 : index
    %5 = vector.load %arg4[%c0_4, %c0_5] : memref<8x1xf32, #tpu.memory_space<vmem>>, vector<8x1xf32>
    %6 = vector.broadcast %5 : vector<8x1xf32> to vector<8x288xf32>
    %7 = arith.addf %4, %6 : vector<8x288xf32>
    %cst = arith.constant 0.000000e+00 : f32
    %8 = vector.broadcast %cst : f32 to vector<8x288xf32>
    %9 = arith.cmpf oge, %7, %8 : vector<8x288xf32>
    %cst_6 = arith.constant 2.000000e-01 : f32
    %10 = vector.broadcast %cst_6 : f32 to vector<8x288xf32>
    %11 = arith.mulf %10, %7 : vector<8x288xf32>
    %12 = arith.select %9, %7, %11 : vector<8x288xi1>, vector<8x288xf32>
    %13 = arith.truncf %12 : vector<8x288xf32> to vector<8x288xbf16>
    %c0_7 = arith.constant 0 : index
    %c0_8 = arith.constant 0 : index
    %c0_9 = arith.constant 0 : index
    %14 = vector.load %arg5[%c0_7, %c0_8, %c0_9] : memref<1x8x288xbf16, #tpu.memory_space<vmem>>, vector<1x8x288xbf16>
    %15 = vector.shape_cast %14 : vector<1x8x288xbf16> to vector<8x288xbf16>
    %16 = vector.shape_cast %13 : vector<8x288xbf16> to vector<1x8x288xbf16>
    tpu.vector_store %arg5[%c0_7, %c0_8, %c0_9], %16 {strides = array<i32>} : memref<1x8x288xbf16, #tpu.memory_space<vmem>>, vector<1x8x288xbf16>,
    return
  }
  func.func @transform_0(%arg0: i32, %arg1: i32) -> (i32, i32, i32) {
    %c0_i32 = arith.constant 0 : i32
    %c0_i32_0 = arith.constant 0 : i32
    return %arg0, %c0_i32, %arg1 : i32, i32, i32
  }
  func.func @transform_1(%arg0: i32, %arg1: i32) -> (i32, i32) {
    %c0_i32 = arith.constant 0 : i32
    %c0_i32_0 = arith.constant 0 : i32
    %c0_i32_1 = arith.constant 0 : i32
    return %c0_i32, %c0_i32_0 : i32, i32
  }
  func.func @transform_2(%arg0: i32, %arg1: i32) -> (i32, i32) {
    %c0_i32 = arith.constant 0 : i32
    %c0_i32_0 = arith.constant 0 : i32
    %c0_i32_1 = arith.constant 0 : i32
    return %c0_i32, %c0_i32_0 : i32, i32
  }
  func.func @transform_3(%arg0: i32, %arg1: i32) -> (i32, i32, i32) {
    %c0_i32 = arith.constant 0 : i32
    %c0_i32_0 = arith.constant 0 : i32
    return %arg0, %c0_i32, %arg1 : i32, i32, i32
  }
}

</mosaic_0001>

<bundles_post_ra>
// kernel: tile.8
= control target key start
LH: loop header
LB: loop body
LE: loop exit
PB: predicated region body
PF: predicated region fallthrough
CT: control target
= control target key end

     0   :  { %s28_s0 = inlined_call_operand.vmem [shape: f32[18], index: 0, kind: input, shape index: {}]   ;;  %s29_s1 = inlined_call_operand.vmem [shape: f32[16,18], index: 1, kind: output, shape index: {}]  }
   0x1   :  { %v4_v0 = vld [vmem:[%s28_s0] ss:$0 sm:$0xff] }
   0x2   :  { %5 = vst [vmem:[%s29_s1] sm:$0xff] %v4_v0 }
   0x3   :  { %8 = vst [vmem:[%s29_s1 + $0x8] sm:$0xff] %v4_v0 }

// kernel: tile.9
= control target key start
LH: loop header
LB: loop body
LE: loop exit
PB: predicated region body
PF: predicated region fallthrough
CT: control target
= control target key end

     0   :  { %vm9_vm0 = vcmask 15360   ;;  %s169_s10 = smov 108   ;;  %s170_s13 = smov 126   ;;  %vm22_vm1 = vcmask 31744   ;;  %vm3_vm2 = vcmask 146432   ;;  %vm13_vm3 = vcmask 130048   ;;  %s257_s0 = inlined_call_operand.vmem [shape: f32[16,18], index: 0, kind: input, shape index: {}]   ;;  %s258_s1 = inlined_call_operand.vmem [shape: f32[1,288], index: 1, kind: output, shape index: {}]  }
   0x1   :  { %v139_v0 = vld [vmem:[%s257_s0 + $0x6] sm:$0x1]   ;;  %v135_v1 = vld [vmem:[%s257_s0 + $0x7] sm:$0x1]   ;;  %v141_v4 = vld [vmem:[%s257_s0 + $0x5] sm:$0x1]  }
   0x2   :  { %34 = vrot.lane.b32.xlu1 %v139_v0, %s169_s10  ;;  %v136_v2 = vld [vmem:[%s257_s0 + $0x7] sm:$0x1]   ;;  %v137_v5 = vld [vmem:[%s257_s0 + $0xe] sm:$0x1]   ;;  %s171_s20 = smov 90   ;;  %s172_s23 = smov 106  }
   0x3   :  { %v10_v3 = vsel %vm9_vm0, %v136_v2, %v135_v1  ;;  %v138_v6 = vld [vmem:[%s257_s0 + $0xe] sm:$0x1]   ;;  %47 = vrot.lane.b32.xlu2 %v141_v4, %s171_s20  ;;  %v140_v7 = vld [vmem:[%s257_s0 + $0xd] sm:$0x1]   ;;  %v142_v9 = vld [vmem:[%s257_s0 + $0xc] sm:$0x1]  }
   0x4   :  { %11 = vrot.lane.b32.xlu0 %v10_v3, %s170_s13  ;;  %v23_v8 = vsel %vm22_vm1, %v138_v6, %v137_v5  ;;  %s173_s26 = smov 124   ;;  %s174_s27 = smov 88   ;;  %v144_v10 = vld [vmem:[%s257_s0 + $0xb] sm:$0x1]   ;;  %v143_v11 = vld [vmem:[%s257_s0 + $0x4] sm:$0x1]  }
   0x5   :  { %s175_s3 = smov 70   ;;  %v145_v12 = vld [vmem:[%s257_s0 + $0x3] sm:$0x1]   ;;  %s176_s6 = smov 72   ;;  %v147_v13 = vld [vmem:[%s257_s0 + $0x2] sm:$0x1]  }
   0x6   :  { %s177_s7 = smov 54   ;;  %v146_v14 = vld [vmem:[%s257_s0 + $0xa] sm:$0x1]   ;;  %s178_s12 = smov 36   ;;  %v148_v15 = vld [vmem:[%s257_s0 + $0x9] sm:$0x1]  }
   0x7   :  { %s179_s15 = smov 52   ;;  %s180_s16 = smov 34   ;;  %v150_v16 = vld [vmem:[%s257_s0 + $0x8] sm:$0x1]   ;;  %v149_v17 = vld [vmem:[%s257_s0 + $0x1] sm:$0x1]  }
   0x8   :  { %s181_s21 = smov 16   ;;  %v151_v18 = vld [vmem:[%s257_s0 + $0xf] sm:$0x1]   ;;  %s182_s24 = smov 18   ;;  %v2_v19 = vld [vmem:[%s257_s0] sm:$0x1]  }
   0x9   :  { %s183_s25 = smov 14   ;;  %4 = vst.msk [vmem:[#allocation0] sm:$0x1] %vm3_vm2, %v2_v19   ;;  %vm16_vm4 = vcmask 1048560   ;;  %vm36_vm5 = vcmask 1032032   ;;  %vm49_vm6 = vcmask 884432  }
   0xa   :  { %40 = vrot.lane.b32.xlu1 %v140_v7, %s172_s23  ;;  %vm26_vm7 = vcmask 113664   ;;  %vm29_vm8 = vcmask 1048544   ;;  %vm42_vm9 = vcmask 1015632   ;;  %vm55_vm10 = vcmask 868032  }
   0xb   :  { %53 = vrot.lane.b32.xlu2 %v142_v9, %s174_s27  ;;  %vm114_vm11 = vcmask 261232   ;;  %vm68_vm12 = vcmask 720432   ;;  %vm62_vm13 = vcmask 736832   ;;  %vm75_vm14 = vcmask 589232  }
   0xc   :  { %24 = vrot.lane.b32.xlu0 %v23_v8, %s173_s26  ;;  %vm88_vm15 = vcmask 441632   ;;  %vm81_vm0 = vcmask 572832   ;;  %vm94_vm1 = vcmask 425232   ;;  %vm107_vm2 = vcmask 277632  }
  0x12   :  { %66 = vrot.lane.b32.xlu1 %v144_v10, %s175_s3 }
  0x13   :  { %73 = vrot.lane.b32.xlu2 %v145_v12, %s177_s7 }
  0x14   :  { %60 = vrot.lane.b32.xlu0 %v143_v11, %s176_s6 }
  0x1a   :  { %86 = vrot.lane.b32.xlu1 %v147_v13, %s178_s12 }
  0x1b   :  { %92 = vrot.lane.b32.xlu2 %v148_v15, %s180_s16 }
  0x1c   :  { %79 = vrot.lane.b32.xlu0 %v146_v14, %s179_s15 }
  0x22   :  { %105 = vrot.lane.b32.xlu1 %v150_v16, %s181_s21 }
  0x23   :  { %112 = vrot.lane.b32.xlu2 %v151_v18, %s183_s25 }
  0x24   :  { %99 = vrot.lane.b32.xlu0 %v149_v17, %s182_s24 }
  0x5d   :  { %v48_v20 = vpop.permute.xlu2 %47  }
  0x65   :  { %v54_v21 = vpop.permute.xlu2 %53  }
  0x6d   :  { %v74_v22 = vpop.permute.xlu2 %73  }
  0x74   :  { %v35_v23 = vpop.permute.xlu1 %34  }
  0x75   :  { %v93_v25 = vpop.permute.xlu2 %92  }
  0x76   :  { %v12_v24 = vpop.permute.xlu0 %11  }
  0x77   :  { %15 = vst.msk [vmem:[#allocation0 + $0x8] sm:$0x1] %vm13_vm3, %v12_v24   ;;  %vm101_vm3 = vcmask 294032  }
  0x78   :  { %17 = vst.msk [vmem:[#allocation0] sm:$0x1] %vm16_vm4, %v12_v24  }
  0x79   :  { %37 = vst.msk [vmem:[#allocation0] sm:$0x1] %vm36_vm5, %v35_v23  }
  0x7a   :  { %50 = vst.msk [vmem:[#allocation0] sm:$0x1] %vm49_vm6, %v48_v20  }
  0x7c   :  { %v41_v26 = vpop.permute.xlu1 %40  }
  0x7d   :  { %v113_v28 = vpop.permute.xlu2 %112  }
  0x7e   :  { %v25_v27 = vpop.permute.xlu0 %24  }
  0x7f   :  { %28 = vst.msk [vmem:[#allocation0 + $0x10] sm:$0x1] %vm26_vm7, %v25_v27  }
  0x80   :  { %31 = vst.msk [vmem:[#allocation0 + $0x8] sm:$0x1] %vm29_vm8, %v25_v27  }
  0x81   :  { %44 = vst.msk [vmem:[#allocation0 + $0x8] sm:$0x1] %vm42_vm9, %v41_v26  }
  0x82   :  { %57 = vst.msk [vmem:[#allocation0 + $0x8] sm:$0x1] %vm55_vm10, %v54_v21  }
  0x83   :  { %116 = vst.msk [vmem:[#allocation0 + $0x10] sm:$0x1] %vm114_vm11, %v113_v28  }
  0x84   :  { %v67_v29 = vpop.permute.xlu1 %66  }
  0x85   :  { %70 = vst.msk [vmem:[#allocation0 + $0x8] sm:$0x1] %vm68_vm12, %v67_v29  }
  0x86   :  { %v61_v30 = vpop.permute.xlu0 %60  }
  0x87   :  { %63 = vst.msk [vmem:[#allocation0] sm:$0x1] %vm62_vm13, %v61_v30  }
  0x88   :  { %76 = vst.msk [vmem:[#allocation0] sm:$0x1] %vm75_vm14, %v74_v22  }
  0x8a   :  { %v130_v31 = vld [vmem:[#allocation0 + $0x10] sm:$0x1] }
  0x8b   :  { %153 = vst [vmem:[%s258_s1 + $0x2] sm:$0x1] %v130_v31 }
  0x8c   :  { %v87_v32 = vpop.permute.xlu1 %86  }
  0x8d   :  { %89 = vst.msk [vmem:[#allocation0] sm:$0x1] %vm88_vm15, %v87_v32  }
  0x8e   :  { %v80_v33 = vpop.permute.xlu0 %79  }
  0x8f   :  { %83 = vst.msk [vmem:[#allocation0 + $0x8] sm:$0x1] %vm81_vm0, %v80_v33  }
  0x90   :  { %96 = vst.msk [vmem:[#allocation0 + $0x8] sm:$0x1] %vm94_vm1, %v93_v25  }
  0x94   :  { %v106_v34 = vpop.permute.xlu1 %105  }
  0x95   :  { %109 = vst.msk [vmem:[#allocation0 + $0x8] sm:$0x1] %vm107_vm2, %v106_v34  }
  0x96   :  { %v100_v35 = vpop.permute.xlu0 %99  }
  0x97   :  { %102 = vst.msk [vmem:[#allocation0] sm:$0x1] %vm101_vm3, %v100_v35  }
  0x9c   :  { %v124_v36 = vld [vmem:[#allocation0 + $0x8] sm:$0x1] }
  0x9d   :  { %152 = vst [vmem:[%s258_s1 + $0x1] sm:$0x1] %v124_v36 }
  0x9e   :  { %v119_v37 = vld [vmem:[#allocation0] sm:$0x1] }
  0x9f   :  { %122 = vst [vmem:[%s258_s1] sm:$0x1] %v119_v37 }

// kernel: johnson_conv_layer.3
= control target key start
LH: loop header
LB: loop body
LE: loop exit
PB: predicated region body
PF: predicated region fallthrough
CT: control target
= control target key end

     0   :  { %s414_s12 = smov 0   ;;  %s416_s13 = smov 0   ;;  %s453_s0 = inlined_call_operand.vmem [shape: f32[2,8,288], index: 0, kind: input, shape index: {}]   ;;  %s454_s1 = inlined_call_operand.vmem [shape: f32[8,1], index: 1, kind: input, shape index: {}]   ;;  %s455_s2 = inlined_call_operand.vmem [shape: f32[8,1], index: 2, kind: input, shape index: {}]   ;;  %s456_s3 = inlined_call_operand.vmem [shape: bf16[2,8,288], index: 3, kind: output, shape index: {}]  }
   0x1   :  { %s418_s14 = smov 0  }
   0x2 LB: > { %s25_s15 = sadd.s32 1, %s387_s13  ;;  %p336_p0 = scmp.ge.s32.totalorder %s391_s14, 1  ;;  %s391_s14 = sphi %s418_s14, %s13_s14   ;;  %s387_s13 = sphi %s416_s13, %s458_s13   ;;  %s383_s12 = sphi %s414_s12, %s457_s12  }
   0x3   : > { %p27_p1 = scmp.ge.s32.totalorder %s25_s15, 2  ;;  %p158_p2 = scmp.lt.s32.totalorder %s391_s14, 3 }
   0x5   : > { %s460_s15 = smov (%p27_p1, %s25_s15), 0  ;;  %p159_p3 = pnand %p336_p0, %p158_p2 }
   0x6   : > { %p191_p4 = scmp.lt.s32.totalorder (!%p159_p3), %s383_s12, 1 }
   0x7   : > { %162 = sbr.rel (%p159_p3) target bundleno = 147 (0x93), region = 32 }
   0xc   : > { %v213_v0 = vld [vmem:[%s454_s1] sm:$0xff]  ;;  %v393_v1 = vmov 0   ;;  %s462_s12 = smov (!%p191_p4, %s383_s12), 1  ;;  %vm243_vm3 = vcmask 257024  }
   0xd   : > { %368 = vset.pattern.permute.xlu0 %v393_v1  ;;  %v222_v2 = vld [vmem:[%s455_s2] sm:$0xff]  ;;  %s341_s20 = smul.u32 24, %s462_s12 }
   0xe   : > { %216 = vperm.xlu0 %368, %v213_v0   ;;  %s342_s24 = smul.u32 12, %s462_s12 }
   0xf   : > { %s198_s23 = scalar_lea.vmem %s453_s0, %s341_s20 }
  0x10   : > { %v210_v4 = vld [vmem:[%s198_s23] sm:$0xff]  ;;  %v211_v5 = vld [vmem:[%s198_s23 + $0x8] sm:$0xff]  ;;  %v212_v6 = vld [vmem:[%s198_s23 + $0x10] sm:$0xff]  ;;  %s208_s27 = scalar_lea.vmem %s456_s3, %s342_s24 }
  0x16   : > { %225 = vperm.xlu0 %368, %v222_v2  }
  0x80   : > { %v217_v3 = vpop.permute.xlu0 %216 }
  0x81   : > { %v219_v7 = vmul.f32 %v217_v3, %v210_v4  ;;  %v220_v8 = vmul.f32 %v217_v3, %v211_v5  ;;  %v221_v9 = vmul.f32 %v217_v3, %v212_v6 }
  0x88   : > { %v226_v10 = vpop.permute.xlu0 %225 }
  0x89   : > { %v228_v11 = vadd.f32 %v226_v10, %v219_v7  ;;  %v229_v12 = vadd.f32 %v226_v10, %v220_v8  ;;  %v230_v13 = vadd.f32 %v226_v10, %v221_v9 }
  0x8b   : > { %vm231_vm0 = vcmp.ge.f32.partialorder %v228_v11, 0.0  ;;  %vm232_vm1 = vcmp.ge.f32.partialorder %v229_v12, 0.0  ;;  %vm233_vm2 = vcmp.ge.f32.partialorder %v230_v13, 0.0  ;;  %v234_v14 = vmul.f32 0.2, %v228_v11 }
  0x8c   : > { %v235_v15 = vmul.f32 0.2, %v229_v12  ;;  %v236_v16 = vmul.f32 0.2, %v230_v13 }
  0x8d   : > { %v237_v17 = vsel %vm231_vm0, %v228_v11, %v234_v14 }
  0x8e   : > { %v238_v18 = vsel %vm232_vm1, %v229_v12, %v235_v15  ;;  %v239_v19 = vsel %vm233_vm2, %v230_v13, %v236_v16 }
  0x8f   : > { %v240_v20 = vpack.c.bf16 %v238_v18, %v237_v17  ;;  %v241_v21 = vpack.c.bf16 %v239_v19, %v239_v19 }
  0x91   : > { %242 = vst [vmem:[%s208_s27] sm:$0xff] %v240_v20 }
  0x92   : > { %244 = vst.msk [vmem:[%s208_s27 + $0x8] sm:$0xf] %vm243_vm3, %v241_v21 }
  0x93 PF: > { %s13_s14 = sadd.s32 1, %s391_s14   ;;  %s457_s12 = smov %s387_s13 }
  0x94   : > { %p10_p5 = scmp.ge.s32.totalorder %s13_s14, 4   ;;  %s458_s13 = smov %s460_s15 }
  0x96   :  { %12 = sbr.rel (!%p10_p5) target bundleno = 2 (0x2), region = 62 }

// kernel: johnson_conv_layer.2
= control target key start
LH: loop header
LB: loop body
LE: loop exit
PB: predicated region body
PF: predicated region fallthrough
CT: control target
= control target key end

     0   :  { %s1224_s18 = smov 0   ;;  %s1226_s19 = smov 0   ;;  %s1387_s0 = inlined_call_operand.vmem [shape: bf16[2,1,4,326], index: 0, kind: input, shape index: {}]   ;;  %s1388_s1 = inlined_call_operand.vmem [shape: bf16[9,8,4], index: 1, kind: input, shape index: {}]   ;;  %s1389_s2 = inlined_call_operand.vmem [shape: f32[1,288], index: 2, kind: input, shape index: {}]   ;;  %s1390_s3 = inlined_call_operand.vmem [shape: f32[2,8,288], index: 3, kind: output, shape index: {0}]   ;;  %s1391_s4 = inlined_call_operand.vmem [shape: f32[8,1], index: 4, kind: output, shape index: {1}]   ;;  %s1392_s5 = inlined_call_operand.vmem [shape: f32[8,1], index: 5, kind: output, shape index: {2}]  }
   0x1   :  { %s1228_s20 = smov 0  }
   0x2 LB: > { %s28_s21 = sadd.s32 1, %s1179_s19  ;;  %p1084_p0 = scmp.ge.s32.totalorder %s1183_s20, 1  ;;  %s1183_s20 = sphi %s1228_s20, %s16_s20   ;;  %s1179_s19 = sphi %s1226_s19, %s1394_s19   ;;  %s1175_s18 = sphi %s1224_s18, %s1393_s18  }
   0x3   : > { %p30_p1 = scmp.ge.s32.totalorder %s28_s21, 2  ;;  %p212_p2 = scmp.lt.s32.totalorder %s1183_s20, 3 }
   0x5   : > { %s1396_s21 = smov (%p30_p1, %s28_s21), 0  ;;  %p213_p3 = pnand %p1084_p0, %p212_p2 }
   0x6   : > { %p252_p4 = scmp.lt.s32.totalorder (!%p213_p3), %s1175_s18, 1  ;;  %p277_p5 = scmp.eq.s32.totalorder (!%p213_p3), %s1175_s18, 0 }
   0x7   : > { %216 = sbr.rel (%p213_p3) target bundleno = 505 (0x1f9), region = 32 }
   0xc   : > { %s1398_s18 = smov (!%p252_p4, %s1175_s18), 1  ;;  %282 = sbr.rel (!%p277_p5) target bundleno = 17 (0x11), region = 36  ;;  %vm283_vm0 = vcmask (%p277_p5), 7168   ;;  %v1185_v0 = vmov (%p277_p5), 0.0  }
   0xd   : > { %s1126_s22 = smul.u32 6, %s1398_s18  ;;  %284 = vst.msk [vmem:[%s1391_s4] sm:$0xff] (%p277_p5), %vm283_vm0, %v1185_v0 }
   0xe   : > { %s1127_s23 = smul.u32 24, %s1398_s18  ;;  %285 = vst.msk [vmem:[%s1392_s5] sm:$0xff] (%p277_p5), %vm283_vm0, %v1185_v0 }
   0xf   : > { %s1245_s26 = scalar_lea.vmem %s1387_s0, %s1126_s22 }
  0x10   : > { %s1250_s29 = scalar_lea.vmem %s1390_s3, %s1127_s23 }
  0x11 PF: > { %v286_v1 = vld [vmem:[%s1245_s26] sm:$0x3f]  ;;  %s1186_s9 = smov 127   ;;  %s1187_s10 = smov 126   ;;  %vm311_vm1 = vcmask 1041408   ;;  %vm307_vm2 = vcmask 31744  }
  0x12   : > { %291 = vst [vmem:[#allocation1] ss:$4 sm:$0xff] %v286_v1  ;;  %v412_v5 = vld [vmem:[%s1245_s26] sm:$0x3f]  ;;  %s1188_s11 = smov 110   ;;  %s1189_s12 = smov 109  }
  0x13   : > { %v486_v9 = vld [vmem:[%s1245_s26] sm:$0x3f]  ;;  %s1190_s13 = smov 108   ;;  %s1191_s14 = smov 92   ;;  %vm304_vm3 = vcmask 1039360   ;;  %vm429_vm4 = vcmask 1031168  }
  0x14   : > { %v560_v13 = vld [vmem:[%s1245_s26] sm:$0x3f]  ;;  %s1192_s15 = smov 91   ;;  %s1193_s16 = smov 90   ;;  %v1095_v49 = vld [vmem:[%s1388_s1 + $0x8] sm:$0xf] }
  0x15   : > { %v634_v17 = vld [vmem:[%s1245_s26] sm:$0x3f]  ;;  %vm503_vm5 = vcmask 900096   ;;  %vm577_vm6 = vcmask 891904   ;;  %vm651_vm7 = vcmask 883712   ;;  %vm725_vm8 = vcmask 752640  }
  0x16   : > { %v708_v21 = vld [vmem:[%s1245_s26] sm:$0x3f]  ;;  %vm799_vm9 = vcmask 744448   ;;  %vm873_vm10 = vcmask 736256   ;;  %vm932_vm11 = vcmask 261120   ;;  %vm952_vm12 = vcmask 7168  }
  0x17   : > { %v782_v25 = vld [vmem:[%s1245_s26] sm:$0x3f] }
  0x18   : > { %v856_v29 = vld [vmem:[%s1245_s26] sm:$0x3f] }
  0x19   : > { %v296_v2 = vld.sshfl [vmem:[#allocation1 + $0x10] sm:$0xff pattern:$0x73625140]  ;;  %v294_v3 = vld.sshfl [vmem:[#allocation1 + $0x8] sm:$0xff pattern:$0x73625140] }
  0x1a   : > { %302 = vrot.lane.b32.xlu0 %v296_v2, %s1186_s9  ;;  %300 = vrot.lane.b32.xlu1 %v294_v3, %s1186_s9  ;;  %v292_v4 = vld.sshfl [vmem:[#allocation1] sm:$0xff pattern:$0x73625140]  ;;  %v1099_v2 = vld [vmem:[%s1388_s1 + $0xc] sm:$0xf] }
  0x1b   : > { %360 = vst [vmem:[#allocation1] ss:$4 sm:$0xff] %v286_v1  ;;  %v287_v37 = vld [vmem:[%s1388_s1] sm:$0xf]  ;;  %v1088_v45 = vld [vmem:[%s1388_s1 + $0x4] sm:$0xf] }
  0x22   : > { %298 = vrot.lane.b32.xlu0 %v292_v4, %s1186_s9  ;;  %v1260_v6 = vld.sshfl [vmem:[#allocation1] sm:$0xff pattern:$0x73625140]  ;;  %v1262_v7 = vld.sshfl [vmem:[#allocation1 + $0x8] sm:$0xff pattern:$0x73625140] }
  0x23   : > { %v1264_v8 = vld.sshfl [vmem:[#allocation1 + $0x10] sm:$0xff pattern:$0x73625140]  ;;  %v367_v36 = vsel %vm311_vm1, %v1260_v6, 0  ;;  %v369_v52 = vsel %vm311_vm1, %v1262_v7, 0 }
  0x24   : > { %416 = vst [vmem:[#allocation1] ss:$4 sm:$0xff] %v412_v5  ;;  %380 = vmatpush.bf16.msra.mxu3 %v367_v36  ;;  %v371_v43 = vsel %vm311_vm1, %v1264_v8, 0 }
  0x27   : > { %1092 = vmatmul.msk.bf16.vlgmr.msra.gmra.mxu3 %vm307_vm2, %v287_v37 }
  0x2b   : > { %v417_v10 = vld.sshfl [vmem:[#allocation1] sm:$0xff pattern:$0x73625140]  ;;  %v419_v11 = vld.sshfl [vmem:[#allocation1 + $0x8] sm:$0xff pattern:$0x73625140] }
  0x2c   : > { %423 = vrot.lane.b32.xlu1 %v417_v10, %s1187_s10  ;;  %425 = vrot.lane.b32.xlu2 %v419_v11, %s1187_s10  ;;  %v421_v12 = vld.sshfl [vmem:[#allocation1 + $0x10] sm:$0xff pattern:$0x73625140] }
  0x2d   : > { %490 = vst [vmem:[#allocation1] ss:$4 sm:$0xff] %v486_v9 }
  0x34   : > { %v495_v14 = vld.sshfl [vmem:[#allocation1 + $0x10] sm:$0xff pattern:$0x73625140]  ;;  %v491_v15 = vld.sshfl [vmem:[#allocation1] sm:$0xff pattern:$0x73625140]  ;;  %427 = vrot.lane.b32.xlu2 %v421_v12, %s1187_s10 }
  0x35   : > { %501 = vrot.lane.b32.xlu1 %v495_v14, %s1188_s11  ;;  %v493_v16 = vld.sshfl [vmem:[#allocation1 + $0x8] sm:$0xff pattern:$0x73625140] }
  0x36   : > { %499 = vrot.lane.b32.xlu0 %v493_v16, %s1188_s11  ;;  %564 = vst [vmem:[#allocation1] ss:$4 sm:$0xff] %v560_v13  ;;  %v1107_v16 = vld [vmem:[%s1388_s1 + $0x14] sm:$0xf] }
  0x3c   : > { %497 = vrot.lane.b32.xlu2 %v491_v15, %s1188_s11 }
  0x3d   : > { %v569_v18 = vld.sshfl [vmem:[#allocation1 + $0x10] sm:$0xff pattern:$0x73625140]  ;;  %v567_v19 = vld.sshfl [vmem:[#allocation1 + $0x8] sm:$0xff pattern:$0x73625140] }
  0x3e   : > { %575 = vrot.lane.b32.xlu0 %v569_v18, %s1189_s12  ;;  %v565_v20 = vld.sshfl [vmem:[#allocation1] sm:$0xff pattern:$0x73625140] }
  0x3f   : > { %571 = vrot.lane.b32.xlu1 %v565_v20, %s1189_s12  ;;  %638 = vst [vmem:[#allocation1] ss:$4 sm:$0xff] %v634_v17  ;;  %v1103_v17 = vld [vmem:[%s1388_s1 + $0x10] sm:$0xf] }
  0x44   : > { %573 = vrot.lane.b32.xlu2 %v567_v19, %s1189_s12 }
  0x46   : > { %v641_v22 = vld.sshfl [vmem:[#allocation1 + $0x8] sm:$0xff pattern:$0x73625140]  ;;  %v639_v23 = vld.sshfl [vmem:[#allocation1] sm:$0xff pattern:$0x73625140] }
  0x47   : > { %647 = vrot.lane.b32.xlu1 %v641_v22, %s1190_s13  ;;  %645 = vrot.lane.b32.xlu0 %v639_v23, %s1190_s13  ;;  %v643_v24 = vld.sshfl [vmem:[#allocation1 + $0x10] sm:$0xff pattern:$0x73625140] }
  0x48   : > { %712 = vst [vmem:[#allocation1] ss:$4 sm:$0xff] %v708_v21 }
  0x4f   : > { %649 = vrot.lane.b32.xlu1 %v643_v24, %s1190_s13  ;;  %v717_v26 = vld.sshfl [vmem:[#allocation1 + $0x10] sm:$0xff pattern:$0x73625140]  ;;  %v715_v27 = vld.sshfl [vmem:[#allocation1 + $0x8] sm:$0xff pattern:$0x73625140] }
  0x50   : > { %721 = vrot.lane.b32.xlu0 %v715_v27, %s1191_s14  ;;  %v713_v28 = vld.sshfl [vmem:[#allocation1] sm:$0xff pattern:$0x73625140] }
  0x51   : > { %719 = vrot.lane.b32.xlu2 %v713_v28, %s1191_s14  ;;  %786 = vst [vmem:[#allocation1] ss:$4 sm:$0xff] %v782_v25 }
  0x58   : > { %v787_v30 = vld.sshfl [vmem:[#allocation1] sm:$0xff pattern:$0x73625140]  ;;  %v791_v31 = vld.sshfl [vmem:[#allocation1 + $0x10] sm:$0xff pattern:$0x73625140] }
  0x59   : > { %797 = vrot.lane.b32.xlu1 %v791_v31, %s1192_s15  ;;  %v789_v32 = vld.sshfl [vmem:[#allocation1 + $0x8] sm:$0xff pattern:$0x73625140]  ;;  %723 = vrot.lane.b32.xlu2 %v717_v26, %s1191_s14 }
  0x5a   : > { %795 = vrot.lane.b32.xlu0 %v789_v32, %s1192_s15  ;;  %860 = vst [vmem:[#allocation1] ss:$4 sm:$0xff] %v856_v29 }
  0x61   : > { %v865_v33 = vld.sshfl [vmem:[#allocation1 + $0x10] sm:$0xff pattern:$0x73625140]  ;;  %v861_v34 = vld.sshfl [vmem:[#allocation1] sm:$0xff pattern:$0x73625140]  ;;  %793 = vrot.lane.b32.xlu2 %v787_v30, %s1192_s15 }
  0x62   : > { %871 = vrot.lane.b32.xlu0 %v865_v33, %s1193_s16  ;;  %867 = vrot.lane.b32.xlu1 %v861_v34, %s1193_s16  ;;  %v863_v35 = vld.sshfl [vmem:[#allocation1 + $0x8] sm:$0xff pattern:$0x73625140] }
  0x69   : > { %869 = vrot.lane.b32.xlu2 %v863_v35, %s1193_s16  ;;  %v1111_v35 = vld [vmem:[%s1388_s1 + $0x18] sm:$0xf] }
  0x86   : > { %v426_v38 = vpop.permute.xlu2 %425 }
  0x8c   : > { %v303_v39 = vpop.permute.xlu0 %302  ;;  %v301_v40 = vpop.permute.xlu1 %300 }
  0x8d   : > { %v306_v41 = vsel %vm304_vm3, %v301_v40, %v303_v39  ;;  %v319_v42 = vsel %vm311_vm1, %v303_v39, 0 }
  0x8e   : > { %v316_v44 = vsel %vm311_vm1, %v306_v41, 0  ;;  %354 = vmatpush.bf16.msra.mxu2 %v319_v42  ;;  %v428_v46 = vpop.permute.xlu2 %427 }
  0x8f   : > { %341 = vmatpush.bf16.msra.mxu1 %v316_v44  ;;  %v431_v47 = vsel %vm429_vm4, %v426_v38, %v428_v46  ;;  %v442_v54 = vsel %vm311_vm1, %v428_v46, 0  ;;  %v1115_v46 = vld [vmem:[%s1388_s1 + $0x1c] sm:$0xf] }
  0x90   : > { %v439_v48 = vsel %vm311_vm1, %v431_v47, 0  ;;  %v1119_v47 = vld [vmem:[%s1388_s1 + $0x20] sm:$0xf] }
  0x91   : > { %1091 = vmatmul.msk.bf16.vlgmr.msra.gmra.mxu2 %vm307_vm2, %v1088_v45  ;;  %464 = vmatpush.bf16.msrb.mxu3 %v439_v48 }
  0x92   : > { %1090 = vmatmul.msk.bf16.vlgmr.msra.gmra.mxu1 %vm307_vm2, %v1088_v45 }
  0x93   : > { %406 = vmatpush.bf16.msrb.mxu1 %v371_v43 }
  0x94   : > { %v299_v50 = vpop.permute.xlu0 %298  ;;  %1097 = vmatmul.msk.bf16.vlgmr.msrb.gmra.mxu3 %vm307_vm2, %v1095_v49 }
  0x95   : > { %v305_v51 = vsel %vm304_vm3, %v299_v50, %v301_v40 }
  0x96   : > { %v313_v53 = vsel %vm311_vm1, %v305_v51, 0  ;;  %v498_v58 = vpop.permute.xlu2 %497 }
  0x97   : > { %328 = vmatpush.bf16.msra.mxu0 %v313_v53 }
  0x9a   : > { %1089 = vmatmul.msk.bf16.vlgmr.msra.gmra.mxu0 %vm307_vm2, %v1088_v45 }
  0x9b   : > { %393 = vmatpush.bf16.msrb.mxu0 %v369_v52 }
  0x9e   : > { %v424_v55 = vpop.permute.xlu1 %423  ;;  %v574_v3 = vpop.permute.xlu2 %573 }
  0x9f   : > { %477 = vmatpush.bf16.msra.mxu0 %v442_v54  ;;  %v430_v56 = vsel %vm429_vm4, %v424_v55, %v426_v38 }
  0xa0   : > { %v436_v57 = vsel %vm311_vm1, %v430_v56, 0 }
  0xa1   : > { %451 = vmatpush.bf16.msrb.mxu2 %v436_v57 }
  0xa2   : > { %1094 = vmatmul.msk.bf16.vlgmr.msrb.gmra.mxu1 %vm307_vm2, %v287_v37 }
  0xa4   : > { %1096 = vmatmul.msk.bf16.vlgmr.msrb.gmra.mxu2 %vm307_vm2, %v1095_v49 }
  0xa7   : > { %v502_v59 = vpop.permute.xlu1 %501 }
  0xa8   : > { %v516_v60 = vsel %vm311_vm1, %v502_v59, 0  ;;  %v500_v61 = vpop.permute.xlu0 %499 }
  0xa9   : > { %v505_v62 = vsel %vm503_vm5, %v500_v61, %v502_v59  ;;  %v504_v63 = vsel %vm503_vm5, %v498_v58, %v500_v61  ;;  %551 = vmatpush.bf16.msra.mxu3 %v516_v60 }
  0xaa   : > { %1093 = vmatmul.msk.bf16.vlgmr.msrb.gmra.mxu0 %vm307_vm2, %v287_v37  ;;  %v513_v0 = vsel %vm311_vm1, %v505_v62, 0  ;;  %v510_v1 = vsel %vm311_vm1, %v504_v63, 0  ;;  %v382_v48 = vpop.f32.mrf.mxu3 }
  0xab   : > { %525 = vmatpush.bf16.msra.mxu1 %v510_v1  ;;  %538 = vmatpush.bf16.msra.mxu2 %v513_v0  ;;  %v720_v11 = vpop.permute.xlu2 %719 }
  0xac   : > { %1102 = vmatmul.msk.bf16.vlgmr.msra.gmra.mxu3 %vm307_vm2, %v1099_v2 }
  0xb0   : > { %v576_v4 = vpop.permute.xlu0 %575 }
  0xb1   : > { %v590_v5 = vsel %vm311_vm1, %v576_v4, 0  ;;  %v572_v6 = vpop.permute.xlu1 %571  ;;  %v579_v7 = vsel %vm577_vm6, %v574_v3, %v576_v4 }
  0xb2   : > { %1100 = vmatmul.msk.bf16.vlgmr.msra.gmra.mxu1 %vm307_vm2, %v1099_v2  ;;  %v578_v8 = vsel %vm577_vm6, %v572_v6, %v574_v3  ;;  %v587_v9 = vsel %vm311_vm1, %v579_v7, 0  ;;  %625 = vmatpush.bf16.msrb.mxu2 %v590_v5 }
  0xb3   : > { %v584_v10 = vsel %vm311_vm1, %v578_v8, 0  ;;  %612 = vmatpush.bf16.msrb.mxu1 %v587_v9  ;;  %v724_v18 = vpop.permute.xlu2 %723 }
  0xb4   : > { %1101 = vmatmul.msk.bf16.vlgmr.msra.gmra.mxu2 %vm307_vm2, %v1099_v2  ;;  %599 = vmatpush.bf16.msrb.mxu0 %v584_v10  ;;  %v738_v28 = vsel %vm311_vm1, %v724_v18, 0 }
  0xb9   : > { %v648_v12 = vpop.permute.xlu1 %647  ;;  %v646_v13 = vpop.permute.xlu0 %645 }
  0xba   : > { %1098 = vmatmul.msk.bf16.vlgmr.msra.gmra.mxu0 %vm307_vm2, %v1095_v49  ;;  %v652_v14 = vsel %vm651_vm7, %v646_v13, %v648_v12  ;;  %v384_v49 = vpop.f32.mrf.mxu3 }
  0xbb   : > { %v658_v15 = vsel %vm311_vm1, %v652_v14, 0  ;;  %v794_v29 = vpop.permute.xlu2 %793 }
  0xbc   : > { %673 = vmatpush.bf16.msrb.mxu3 %v658_v15 }
  0xbf   : > { %1108 = vmatmul.msk.bf16.vlgmr.msrb.gmra.mxu3 %vm307_vm2, %v1107_v16 }
  0xc1   : > { %v650_v19 = vpop.permute.xlu1 %649 }
  0xc2   : > { %1105 = vmatmul.msk.bf16.vlgmr.msrb.gmra.mxu1 %vm307_vm2, %v1103_v17  ;;  %v653_v20 = vsel %vm651_vm7, %v648_v12, %v650_v19  ;;  %v664_v21 = vsel %vm311_vm1, %v650_v19, 0  ;;  %v722_v22 = vpop.permute.xlu0 %721 }
  0xc3   : > { %v661_v23 = vsel %vm311_vm1, %v653_v20, 0  ;;  %v726_v24 = vsel %vm725_vm8, %v720_v11, %v722_v22  ;;  %v727_v25 = vsel %vm725_vm8, %v722_v22, %v724_v18  ;;  %699 = vmatpush.bf16.msra.mxu1 %v664_v21  ;;  %v870_v38 = vpop.permute.xlu2 %869 }
  0xc4   : > { %1106 = vmatmul.msk.bf16.vlgmr.msrb.gmra.mxu2 %vm307_vm2, %v1103_v17  ;;  %686 = vmatpush.bf16.msra.mxu0 %v661_v23  ;;  %v732_v26 = vsel %vm311_vm1, %v726_v24, 0  ;;  %v735_v27 = vsel %vm311_vm1, %v727_v25, 0 }
  0xc5   : > { %747 = vmatpush.bf16.msra.mxu2 %v732_v26  ;;  %760 = vmatpush.bf16.msra.mxu3 %v735_v27 }
  0xca   : > { %1104 = vmatmul.msk.bf16.vlgmr.msrb.gmra.mxu0 %vm307_vm2, %v1103_v17 }
  0xcb   : > { %773 = vmatpush.bf16.msrb.mxu0 %v738_v28  ;;  %v798_v30 = vpop.permute.xlu1 %797 }
  0xcc   : > { %v812_v31 = vsel %vm311_vm1, %v798_v30, 0  ;;  %v796_v32 = vpop.permute.xlu0 %795 }
  0xcd   : > { %v801_v33 = vsel %vm799_vm9, %v796_v32, %v798_v30  ;;  %v800_v34 = vsel %vm799_vm9, %v794_v29, %v796_v32  ;;  %847 = vmatpush.bf16.msrb.mxu3 %v812_v31 }
  0xce   : > { %v809_v36 = vsel %vm311_vm1, %v801_v33, 0  ;;  %v806_v37 = vsel %vm311_vm1, %v800_v34, 0 }
  0xcf   : > { %1113 = vmatmul.msk.bf16.vlgmr.msra.gmra.mxu3 %vm307_vm2, %v1111_v35  ;;  %821 = vmatpush.bf16.msrb.mxu1 %v806_v37 }
  0xd0   : > { %834 = vmatpush.bf16.msrb.mxu2 %v809_v36 }
  0xd2   : > { %1110 = vmatmul.msk.bf16.vlgmr.msra.gmra.mxu1 %vm307_vm2, %v1107_v16 }
  0xd4   : > { %1112 = vmatmul.msk.bf16.vlgmr.msra.gmra.mxu2 %vm307_vm2, %v1111_v35  ;;  %v872_v39 = vpop.permute.xlu0 %871  ;;  %v868_v40 = vpop.permute.xlu1 %867 }
  0xd5   : > { %v886_v41 = vsel %vm311_vm1, %v872_v39, 0  ;;  %v875_v42 = vsel %vm873_vm10, %v870_v38, %v872_v39  ;;  %v874_v43 = vsel %vm873_vm10, %v868_v40, %v870_v38 }
  0xd6   : > { %v883_v44 = vsel %vm311_vm1, %v875_v42, 0  ;;  %921 = vmatpush.bf16.msra.mxu2 %v886_v41  ;;  %v880_v45 = vsel %vm311_vm1, %v874_v43, 0 }
  0xd7   : > { %908 = vmatpush.bf16.msra.mxu1 %v883_v44 }
  0xda   : > { %1109 = vmatmul.msk.bf16.vlgmr.msra.gmra.mxu0 %vm307_vm2, %v1107_v16 }
  0xdb   : > { %895 = vmatpush.bf16.msra.mxu0 %v880_v45 }
  0xdf   : > { %1118 = vmatmul.msk.bf16.vlgmr.msrb.gmra.mxu3 %vm307_vm2, %v1115_v46 }
  0xe2   : > { %1116 = vmatmul.msk.bf16.vlgmr.msrb.gmra.mxu1 %vm307_vm2, %v1115_v46 }
  0xe4   : > { %1117 = vmatmul.msk.bf16.vlgmr.msrb.gmra.mxu2 %vm307_vm2, %v1115_v46 }
  0xea   : > { %1114 = vmatmul.msk.bf16.vlgmr.msrb.gmra.mxu0 %vm307_vm2, %v1111_v35 }
  0xf2   : > { %1121 = vmatmul.msk.bf16.vlgmr.msra.gmra.mxu1 %vm307_vm2, %v1119_v47 }
  0xf4   : > { %1122 = vmatmul.msk.bf16.vlgmr.msra.gmra.mxu2 %vm307_vm2, %v1119_v47 }
  0xfa   : > { %1120 = vmatmul.msk.bf16.vlgmr.msra.gmra.mxu0 %vm307_vm2, %v1119_v47 }
 0x10f   : > { %v343_v50 = vpop.f32.mrf.mxu1 }
 0x114   : > { %v356_v51 = vpop.f32.mrf.mxu2 }
 0x117   : > { %v330_v52 = vpop.f32.mrf.mxu0  ;;  %v345_v53 = vpop.f32.mrf.mxu1 }
 0x118   : > { %v383_v54 = vadd.f32 %v382_v48, %v330_v52  ;;  %v466_v55 = vpop.f32.mrf.mxu3 }
 0x11c   : > { %v358_v56 = vpop.f32.mrf.mxu2 }
 0x11f   : > { %v332_v57 = vpop.f32.mrf.mxu0  ;;  %v408_v58 = vpop.f32.mrf.mxu1 }
 0x120   : > { %v409_v59 = vadd.f32 %v408_v58, %v356_v51  ;;  %v468_v60 = vpop.f32.mrf.mxu3 }
 0x127   : > { %v453_v61 = vpop.f32.mrf.mxu2  ;;  %v395_v62 = vpop.f32.mrf.mxu0 }
 0x128   : > { %v483_v63 = vadd.f32 %v453_v61, %v383_v54  ;;  %v396_v0 = vadd.f32 %v395_v62, %v343_v50  ;;  %v410_v1 = vpop.f32.mrf.mxu1  ;;  %v934_v50 = vld [vmem:[%s1389_s2] sm:$0x7] }
 0x129   : > { %v937_v54 = vperm.slane %v934_v50, 1  ;;  %v936_v57 = vperm.slane %v934_v50, 0  ;;  %v938_v58 = vperm.slane %v934_v50, 2 }
 0x12a   : > { %v484_v2 = vadd.f32 %v466_v55, %v396_v0 }
 0x12f   : > { %v455_v3 = vpop.f32.mrf.mxu2  ;;  %v397_v4 = vpop.f32.mrf.mxu0 }
 0x130   : > { %v527_v5 = vpop.f32.mrf.mxu1  ;;  %v553_v6 = vpop.f32.mrf.mxu3 }
 0x131   : > { %v557_v39 = vadd.f32 %v527_v5, %v483_v63 }
 0x137   : > { %v540_v7 = vpop.f32.mrf.mxu2  ;;  %v479_v8 = vpop.f32.mrf.mxu0 }
 0x138   : > { %v529_v9 = vpop.f32.mrf.mxu1  ;;  %v555_v10 = vpop.f32.mrf.mxu3  ;;  %v558_v31 = vadd.f32 %v540_v7, %v484_v2  ;;  %v485_v35 = vadd.f32 %v479_v8, %v409_v59 }
 0x13a   : > { %v559_v40 = vadd.f32 %v553_v6, %v485_v35 }
 0x13f   : > { %v542_v11 = vpop.f32.mrf.mxu2  ;;  %v481_v12 = vpop.f32.mrf.mxu0 }
 0x140   : > { %v614_v13 = vpop.f32.mrf.mxu1 }
 0x141   : > { %v632_v32 = vadd.f32 %v614_v13, %v558_v31 }
 0x142   : > { %v675_v14 = vpop.f32.mrf.mxu3 }
 0x147   : > { %v627_v15 = vpop.f32.mrf.mxu2  ;;  %v601_v16 = vpop.f32.mrf.mxu0 }
 0x148   : > { %v616_v17 = vpop.f32.mrf.mxu1  ;;  %v633_v42 = vadd.f32 %v627_v15, %v559_v40  ;;  %v631_v43 = vadd.f32 %v601_v16, %v557_v39  ;;  %v954_v16 = vld [vmem:[%s1392_s5] sm:$0xff] }
 0x14a   : > { %v677_v18 = vpop.f32.mrf.mxu3  ;;  %v705_v51 = vadd.f32 %v675_v14, %v631_v43  ;;  %v945_v14 = vld [vmem:[%s1391_s4] sm:$0xff] }
 0x14f   : > { %v629_v19 = vpop.f32.mrf.mxu2  ;;  %v603_v20 = vpop.f32.mrf.mxu0 }
 0x150   : > { %v701_v21 = vpop.f32.mrf.mxu1 }
 0x151   : > { %v707_v47 = vadd.f32 %v701_v21, %v633_v42 }
 0x152   : > { %v762_v22 = vpop.f32.mrf.mxu3 }
 0x157   : > { %v749_v23 = vpop.f32.mrf.mxu2  ;;  %v688_v24 = vpop.f32.mrf.mxu0 }
 0x158   : > { %v703_v25 = vpop.f32.mrf.mxu1  ;;  %v706_v37 = vadd.f32 %v688_v24, %v632_v32  ;;  %v779_v53 = vadd.f32 %v749_v23, %v705_v51 }
 0x15a   : > { %v764_v26 = vpop.f32.mrf.mxu3  ;;  %v780_v41 = vadd.f32 %v762_v22, %v706_v37 }
 0x15f   : > { %v751_v27 = vpop.f32.mrf.mxu2  ;;  %v690_v28 = vpop.f32.mrf.mxu0 }
 0x160   : > { %v823_v29 = vpop.f32.mrf.mxu1 }
 0x161   : > { %v853_v55 = vadd.f32 %v823_v29, %v779_v53 }
 0x162   : > { %v849_v30 = vpop.f32.mrf.mxu3 }
 0x167   : > { %v836_v33 = vpop.f32.mrf.mxu2  ;;  %v775_v34 = vpop.f32.mrf.mxu0 }
 0x168   : > { %v825_v36 = vpop.f32.mrf.mxu1  ;;  %v854_v44 = vadd.f32 %v836_v33, %v780_v41  ;;  %v781_v52 = vadd.f32 %v775_v34, %v707_v47 }
 0x16a   : > { %v851_v38 = vpop.f32.mrf.mxu3  ;;  %v855_v56 = vadd.f32 %v849_v30, %v781_v52 }
 0x16f   : > { %v838_v45 = vpop.f32.mrf.mxu2  ;;  %v777_v46 = vpop.f32.mrf.mxu0 }
 0x170   : > { %v910_v48 = vpop.f32.mrf.mxu1 }
 0x171   : > { %v928_v49 = vadd.f32 %v910_v48, %v854_v44 }
 0x173   : > { %931 = vst [vmem:[%s1250_s29 + $0x8] sm:$0xff] %v928_v49  ;;  %v943_v61 = vmul.f32 %v937_v54, %v928_v49 }
 0x175   : > { %v956_v3 = vmul.f32 %v943_v61, %v928_v49 }
 0x177   : > { %v923_v59 = vpop.f32.mrf.mxu2  ;;  %v897_v60 = vpop.f32.mrf.mxu0 }
 0x178   : > { %v929_v62 = vadd.f32 %v923_v59, %v855_v56  ;;  %v927_v63 = vadd.f32 %v897_v60, %v853_v55  ;;  %v912_v0 = vpop.f32.mrf.mxu1 }
 0x17a   : > { %930 = vst [vmem:[%s1250_s29] sm:$0xff] %v927_v63  ;;  %v942_v1 = vmul.f32 %v936_v57, %v927_v63  ;;  %v944_v2 = vmul.f32 %v938_v58, %v929_v62 }
 0x17b   : > { %933 = vst.msk [vmem:[%s1250_s29 + $0x10] sm:$0xff] %vm932_vm11, %v929_v62 }
 0x17c   : > { %v955_v4 = vmul.f32 %v942_v1, %v927_v63  ;;  %v946_v5 = vadd.f32 %v943_v61, %v942_v1  ;;  %v957_v6 = vmul.f32 %v944_v2, %v929_v62  ;;  %v947_v7 = vsel %vm932_vm11, %v944_v2, 0.0 }
 0x17e   : > { %v948_v8 = vadd.f32 %v947_v7, %v946_v5  ;;  %v958_v9 = vadd.f32 %v956_v3, %v955_v4  ;;  %v959_v12 = vsel %vm932_vm11, %v957_v6, 0.0 }
 0x17f   : > { %v899_v10 = vpop.f32.mrf.mxu0  ;;  %v925_v11 = vpop.f32.mrf.mxu2 }
 0x180   : > { %949 = vadd.xlane.f32.xlu0 %v948_v8  ;;  %v960_v13 = vadd.f32 %v959_v12, %v958_v9 }
 0x182   : > { %961 = vadd.xlane.f32.xlu1 %v960_v13 }
 0x1f3   : > { %v950_v15 = vpop.xlane.xlu0 %949 }
 0x1f4   : > { %v951_v17 = vadd.f32 %v950_v15, %v945_v14 }
 0x1f5   : > { %v962_v18 = vpop.xlane.xlu1 %961 }
 0x1f6   : > { %953 = vst.msk [vmem:[%s1391_s4] sm:$0xff] %vm952_vm12, %v951_v17  ;;  %v963_v19 = vadd.f32 %v962_v18, %v954_v16 }
 0x1f8   : > { %964 = vst.msk [vmem:[%s1392_s5] sm:$0xff] %vm952_vm12, %v963_v19 }
 0x1f9 PF: > { %s16_s20 = sadd.s32 1, %s1183_s20   ;;  %s1393_s18 = smov %s1179_s19 }
 0x1fa   : > { %p13_p6 = scmp.ge.s32.totalorder %s16_s20, 4   ;;  %s1394_s19 = smov %s1396_s21 }
 0x1fc   :  { %15 = sbr.rel (!%p13_p6) target bundleno = 2 (0x2), region = 93 }

</bundles_post_ra>
